<compile_context>
chip_gen: v6e
topology: v6e:2x2x1
jax: 0.10.0
libtpu: 0.0.40
codegen_flags: <defaults>
</compile_context>

<pallas_src>
import math

import jax
import jax.numpy as jnp
from jax.experimental import pallas as pl
from jax.experimental.pallas import tpu as pltpu

# Below this size the pallas_call launch cost dominates the copy cost;
# just return phi directly.
_SMALL_INPUT_BYTES = 256 * 1024


def _passthrough_kernel(phi_ref, out_ref, copy_sem):
    # Single whole-array HBM -> HBM DMA.  No VMEM staging, no vector ops.
    cp = pltpu.make_async_copy(phi_ref, out_ref, copy_sem)
    cp.start()
    cp.wait()


def sigma_layer(phi: jax.Array, sigma: jax.Array, *, force_pallas: bool = False):
    """Pallas equivalent of SigmaLayer.forward: returns (phi, sigma)."""
    assert sigma.shape == (1, 1)

    nbytes = math.prod(phi.shape) * jnp.dtype(phi.dtype).itemsize
    if nbytes < _SMALL_INPUT_BYTES and not force_pallas:
        # Small-input bypass: the identity costs nothing; sigma is a pure
        # parameter passthrough.
        return phi, sigma

    phi_out = pl.pallas_call(
        _passthrough_kernel,
        out_shape=jax.ShapeDtypeStruct(phi.shape, phi.dtype),
        in_specs=[pl.BlockSpec(memory_space=pl.ANY)],
        out_specs=pl.BlockSpec(memory_space=pl.ANY),
        scratch_shapes=[pltpu.SemaphoreType.DMA(())],
    )(phi)

    # sigma is never touched by the kernel — no VMEM traffic for a scalar.
    return phi_out, sigma


def init_sigma_param(sigma_init: float) -> jax.Array:
    # Deterministic parameter init, mirrors self.sigma.data.fill_(sigma_init).
    return jnp.full((1, 1), sigma_init, dtype=jnp.float32)


if __name__ == "__main__":
    key = jax.random.PRNGKey(0)
    # Small feature matrix consistent with a DKL feature extractor output:
    # batch=8, hidden=32.
    phi = jax.random.normal(key, (8, 32), dtype=jnp.float32)
    sigma = init_sigma_param(sigma_init=0.1)

    # 1) Common path: small input takes the bypass (no kernel launch).
    phi_out, sigma_out = sigma_layer(phi, sigma)
    jax.block_until_ready((phi_out, sigma_out))
    assert phi_out.shape == phi.shape and phi_out.dtype == phi.dtype
    assert sigma_out.shape == (1, 1)
    assert bool(jnp.all(phi_out == phi))
    assert bool(jnp.allclose(sigma_out, 0.1))

    # 2) Exercise the actual Pallas kernel (single HBM->HBM DMA passthrough).
    phi_out_k, sigma_out_k = sigma_layer(phi, sigma, force_pallas=True)
    jax.block_until_ready((phi_out_k, sigma_out_k))
    assert phi_out_k.shape == phi.shape and phi_out_k.dtype == phi.dtype
    assert bool(jnp.all(phi_out_k == phi))
    assert bool(jnp.allclose(sigma_out_k, 0.1))

    print("KERNEL_OK")
</pallas_src>

<mosaic_0001>
module attributes {stable_mosaic.version = 11 : i64} {
  func.func @_passthrough_kernel(%arg0: memref<8x32xf32, #tpu.memory_space<any>>, %arg1: memref<8x32xf32, #tpu.memory_space<any>>, %arg2: memref<!tpu.dma_semaphore, #tpu.memory_space<semaphore_mem>>) attributes {dimension_semantics = [], scalar_prefetch = 0 : i64, scratch_operands = 1 : i64, tpu.core_type = #tpu.core_type<tc>} {
    tpu.enqueue_dma source(%arg0 : memref<8x32xf32, #tpu.memory_space<any>>) target(%arg1 : memref<8x32xf32, #tpu.memory_space<any>>) target_semaphore(%arg2 : memref<!tpu.dma_semaphore, #tpu.memory_space<semaphore_mem>>)
    tpu.wait_dma2 semaphore(%arg2 : memref<!tpu.dma_semaphore, #tpu.memory_space<semaphore_mem>>) src(%arg0 : memref<8x32xf32, #tpu.memory_space<any>>) dst(%arg1 : memref<8x32xf32, #tpu.memory_space<any>>)
    return
  }
}

</mosaic_0001>

<bundles_post_ra>
// kernel: tpu_custom_call.1
= control target key start
LH: loop header
LB: loop body
LE: loop exit
PB: predicated region body
PF: predicated region fallthrough
CT: control target
= control target key end

     0   :  { %s28_s6 = smov [#allocation2]   ;;  %s29_s7 = smov 131072   ;;  %s47_s0 = inlined_call_operand.hbm [shape: f32[8,32], index: 0, kind: input, shape index: {}]   ;;  %s48_s1 = inlined_call_operand.hbm [shape: f32[8,32], index: 1, kind: output, shape index: {}]  }
   0x1   :  { %s30_s8 = smov 0  }
   0x2   :  { %12 = dma.general %s47_s0, 128, %s48_s1, %s28_s6, %s29_s7, [#allocation4], %s30_s8, 0  }
   0x3   :  { %26 = dma.done.wait [#allocation2], 128 }
   0x4   :  { %27 = vsyncadd [#allocation2], 4294967168 }
   0x5   :  { %16 = vsyncmov [#allocation2] }
   0x8   :  { %s17_s13 = vpop.sfrf %16 }
   0x9   :  { %p22_p0 = scmp.ne.s32.totalorder %s17_s13, 0 }
   0xb   :  { %21 = shalt.err (%p22_p0)  }

</bundles_post_ra>
